<compile_context>
chip_gen: v7x
topology: tpu7x:2x2x1
jax: 0.10.0
libtpu: 0.0.40
codegen_flags: <defaults>
</compile_context>

<pallas_src>
import jax
import jax.numpy as jnp
from jax.experimental import pallas as pl
from jax.experimental.pallas import tpu as pltpu


def _rnn_kernel(x_ref, wih_ref, whh_ref, b_ref, wfc_ref, bfc_ref, out_ref):
    # x_ref: (T*B, I) bf16, time-major.  out_ref: (B, O) f32.
    TB, _ = x_ref.shape
    H = whh_ref.shape[0]
    B = out_ref.shape[0]
    T = TB // B

    # --- hoisted VMEM->vreg loads: once, not once per unrolled step ---
    whh = whh_ref[...]          # (H, H) bf16, stays vreg-resident across the loop
    wfc = wfc_ref[...]          # (H, O) bf16
    bfc = bfc_ref[...]          # (1, O) f32

    # --- hoisted input projection (off the serial chain): one (T*B, I) @ (I, H) matmul ---
    xw = jnp.dot(x_ref[...], wih_ref[...],
                 preferred_element_type=jnp.float32) + b_ref[...]     # (T*B, H) f32

    # --- sequential recurrence ---
    # t = 0: h0 is all zeros, so the W_hh matmul drops out entirely.
    h = jnp.tanh(xw[0:B, :])                                          # (B, H) f32
    # t = 1..T-1: only the small (B, H) @ (H, H) matmul + add + tanh on the serial chain.
    # Static unroll is fine at small, fixed T; switch to lax.fori_loop(unroll=k) if T grows.
    for t in range(1, T):
        rec = jnp.dot(h.astype(whh.dtype), whh,
                      preferred_element_type=jnp.float32)             # (B, H) f32
        h = jnp.tanh(xw[t * B:(t + 1) * B, :] + rec)                  # tile-aligned slice

    # --- final FC on the last hidden state (lane-dense (B, O) store) ---
    out_ref[...] = (
        jnp.dot(h.astype(wfc.dtype), wfc, preferred_element_type=jnp.float32) + bfc
    ).astype(out_ref.dtype)


def prepare_params(w_ih, w_hh, b_ih, b_hh, w_fc, b_fc):
    """One-time preprocessing of the constant parameters (do NOT redo per call):
       transpose so every in-kernel matmul is plain (M,K)@(K,N), cast MXU operands to bf16,
       and fold the two RNN biases into one."""
    H = w_hh.shape[0]
    O = w_fc.shape[0]
    return (
        w_ih.T.astype(jnp.bfloat16),                       # (I, H)
        w_hh.T.astype(jnp.bfloat16),                       # (H, H)
        (b_ih + b_hh).reshape(1, H).astype(jnp.float32),   # (1, H)
        w_fc.T.astype(jnp.bfloat16),                       # (H, O)
        b_fc.reshape(1, O).astype(jnp.float32),            # (1, O)
    )


def handwriting_rnn_forward(x, params):
    """x: (B, T, I) float32 (batch_first).  params: output of prepare_params()."""
    wih_t, whh_t, b_rnn, wfc_t, bfc = params
    B, T, I = x.shape
    O = wfc_t.shape[1]

    # Per-call layout work stays in the wrapper: one tiny transpose + bf16 cast,
    # producing the time-major (T*B, I) slab the kernel consumes directly.
    x_tm = jnp.transpose(x, (1, 0, 2)).reshape(T * B, I).astype(jnp.bfloat16)

    vmem = pl.BlockSpec(memory_space=pltpu.MemorySpace.VMEM)
    return pl.pallas_call(
        _rnn_kernel,
        out_shape=jax.ShapeDtypeStruct((B, O), jnp.float32),
        in_specs=[vmem] * 6,
        out_specs=vmem,
    )(x_tm, wih_t, whh_t, b_rnn, wfc_t, bfc)


forward_jit = jax.jit(handwriting_rnn_forward)


def _reference_forward(x, w_ih, w_hh, b_ih, b_hh, w_fc, b_fc):
    """Pure-f32 equivalent of the PyTorch module's forward."""
    B = x.shape[0]
    H = w_hh.shape[0]
    h0 = jnp.zeros((B, H), jnp.float32)

    def step(h, x_t):
        return jnp.tanh(x_t @ w_ih.T + b_ih + h @ w_hh.T + b_hh), None

    h_last, _ = jax.lax.scan(step, h0, jnp.transpose(x, (1, 0, 2)))
    return h_last @ w_fc.T + b_fc


def _kernel_semantics_reference(x, w_ih, w_hh, b_ih, b_hh, w_fc, b_fc):
    """Pure-JAX mirror of the kernel's numerics (bf16 MXU operands, f32 accumulation,
       t=0 recurrence matmul skipped)."""
    bf, f32 = jnp.bfloat16, jnp.float32
    B, T, I = x.shape
    H = w_hh.shape[0]
    x_tm = jnp.transpose(x, (1, 0, 2)).reshape(T * B, I).astype(bf)
    xw = jnp.dot(x_tm, w_ih.T.astype(bf), preferred_element_type=f32) + (b_ih + b_hh)
    h = jnp.tanh(xw[0:B, :])
    for t in range(1, T):
        rec = jnp.dot(h.astype(bf), w_hh.T.astype(bf), preferred_element_type=f32)
        h = jnp.tanh(xw[t * B:(t + 1) * B, :] + rec)
    return jnp.dot(h.astype(bf), w_fc.T.astype(bf), preferred_element_type=f32) + b_fc


if __name__ == "__main__":
    # Small shapes consistent with the module (single-layer RNN, input_size == output_size).
    B, T, I, H = 8, 8, 256, 128
    O = I

    key = jax.random.PRNGKey(0)
    ks = jax.random.split(key, 7)
    s = 1.0 / jnp.sqrt(H)

    x = jax.random.normal(ks[0], (B, T, I), jnp.float32)
    w_ih = jax.random.uniform(ks[1], (H, I), jnp.float32, -s, s)
    w_hh = jax.random.uniform(ks[2], (H, H), jnp.float32, -s, s)
    b_ih = jax.random.uniform(ks[3], (H,), jnp.float32, -s, s)
    b_hh = jax.random.uniform(ks[4], (H,), jnp.float32, -s, s)
    w_fc = jax.random.uniform(ks[5], (O, H), jnp.float32, -s, s)
    b_fc = jax.random.uniform(ks[6], (O,), jnp.float32, -s, s)

    # Constant-parameter preprocessing happens exactly once, outside the hot path.
    params = jax.tree_util.tree_map(jax.block_until_ready,
                                    prepare_params(w_ih, w_hh, b_ih, b_hh, w_fc, b_fc))

    out = forward_jit(x, params)
    out = jax.block_until_ready(out)
    assert out.shape == (B, O)

    # (1) Mechanics check: must match a JAX reference with identical bf16-operand /
    #     f32-accumulation semantics to tight tolerance.
    ref_bf = _kernel_semantics_reference(x, w_ih, w_hh, b_ih, b_hh, w_fc, b_fc)
    assert jnp.allclose(out, ref_bf, atol=2e-3, rtol=2e-3)

    # (2) Semantics check vs. the pure-f32 PyTorch-equivalent forward; tolerance sized
    #     for bf16 matmul operands across T=8 tanh steps.  (For much longer sequences,
    #     keep the recurrent-state operand in f32 to avoid compounding bf16 drift.)
    ref_f32 = _reference_forward(x, w_ih, w_hh, b_ih, b_hh, w_fc, b_fc)
    assert jnp.allclose(out, ref_f32, atol=5e-2, rtol=5e-2)

    print("KERNEL_OK")
</pallas_src>

<mosaic_0001>
module attributes {stable_mosaic.version = 11 : i64} {
  func.func @_rnn_kernel(%arg0: memref<64x256xbf16, #tpu.memory_space<vmem>>, %arg1: memref<256x128xbf16, #tpu.memory_space<vmem>>, %arg2: memref<128x128xbf16, #tpu.memory_space<vmem>>, %arg3: memref<1x128xf32, #tpu.memory_space<vmem>>, %arg4: memref<128x256xbf16, #tpu.memory_space<vmem>>, %arg5: memref<1x256xf32, #tpu.memory_space<vmem>>, %arg6: memref<8x256xf32, #tpu.memory_space<vmem>>) attributes {dimension_semantics = [], scalar_prefetch = 0 : i64, scratch_operands = 0 : i64, tpu.core_type = #tpu.core_type<tc>} {
    %c0 = arith.constant 0 : index
    %c0_0 = arith.constant 0 : index
    %0 = vector.load %arg2[%c0, %c0_0] : memref<128x128xbf16, #tpu.memory_space<vmem>>, vector<128x128xbf16>
    %c0_1 = arith.constant 0 : index
    %c0_2 = arith.constant 0 : index
    %1 = vector.load %arg4[%c0_1, %c0_2] : memref<128x256xbf16, #tpu.memory_space<vmem>>, vector<128x256xbf16>
    %c0_3 = arith.constant 0 : index
    %c0_4 = arith.constant 0 : index
    %2 = vector.load %arg5[%c0_3, %c0_4] : memref<1x256xf32, #tpu.memory_space<vmem>>, vector<1x256xf32>
    %c0_5 = arith.constant 0 : index
    %c0_6 = arith.constant 0 : index
    %3 = vector.load %arg0[%c0_5, %c0_6] : memref<64x256xbf16, #tpu.memory_space<vmem>>, vector<64x256xbf16>
    %c0_7 = arith.constant 0 : index
    %c0_8 = arith.constant 0 : index
    %4 = vector.load %arg1[%c0_7, %c0_8] : memref<256x128xbf16, #tpu.memory_space<vmem>>, vector<256x128xbf16>
    %cst = arith.constant dense<0.000000e+00> : vector<64x128xf32>
    %5 = tpu.matmul %3, %4, %cst {dimension_numbers = #tpu.dot_dimension_numbers<[1], [0], [0], [1], [0, 0, 1, 1], [], []>} : vector<64x256xbf16>, vector<256x128xbf16>, vector<64x128xf32> -> vector<64x128xf32>
    %c0_9 = arith.constant 0 : index
    %c0_10 = arith.constant 0 : index
    %6 = vector.load %arg3[%c0_9, %c0_10] : memref<1x128xf32, #tpu.memory_space<vmem>>, vector<1x128xf32>
    %7 = vector.broadcast %6 : vector<1x128xf32> to vector<64x128xf32>
    %8 = arith.addf %5, %7 : vector<64x128xf32>
    %9 = vector.extract_strided_slice %8 {offsets = [0, 0], sizes = [8, 128], strides = [1, 1]} : vector<64x128xf32> to vector<8x128xf32>
    %10 = math.tanh %9 : vector<8x128xf32>
    %11 = arith.truncf %10 : vector<8x128xf32> to vector<8x128xbf16>
    %cst_11 = arith.constant dense<0.000000e+00> : vector<8x128xf32>
    %12 = tpu.matmul %11, %0, %cst_11 {dimension_numbers = #tpu.dot_dimension_numbers<[1], [0], [0], [1], [0, 0, 1, 1], [], []>} : vector<8x128xbf16>, vector<128x128xbf16>, vector<8x128xf32> -> vector<8x128xf32>
    %13 = vector.extract_strided_slice %8 {offsets = [8, 0], sizes = [8, 128], strides = [1, 1]} : vector<64x128xf32> to vector<8x128xf32>
    %14 = arith.addf %13, %12 : vector<8x128xf32>
    %15 = math.tanh %14 : vector<8x128xf32>
    %16 = arith.truncf %15 : vector<8x128xf32> to vector<8x128xbf16>
    %cst_12 = arith.constant dense<0.000000e+00> : vector<8x128xf32>
    %17 = tpu.matmul %16, %0, %cst_12 {dimension_numbers = #tpu.dot_dimension_numbers<[1], [0], [0], [1], [0, 0, 1, 1], [], []>} : vector<8x128xbf16>, vector<128x128xbf16>, vector<8x128xf32> -> vector<8x128xf32>
    %18 = vector.extract_strided_slice %8 {offsets = [16, 0], sizes = [8, 128], strides = [1, 1]} : vector<64x128xf32> to vector<8x128xf32>
    %19 = arith.addf %18, %17 : vector<8x128xf32>
    %20 = math.tanh %19 : vector<8x128xf32>
    %21 = arith.truncf %20 : vector<8x128xf32> to vector<8x128xbf16>
    %cst_13 = arith.constant dense<0.000000e+00> : vector<8x128xf32>
    %22 = tpu.matmul %21, %0, %cst_13 {dimension_numbers = #tpu.dot_dimension_numbers<[1], [0], [0], [1], [0, 0, 1, 1], [], []>} : vector<8x128xbf16>, vector<128x128xbf16>, vector<8x128xf32> -> vector<8x128xf32>
    %23 = vector.extract_strided_slice %8 {offsets = [24, 0], sizes = [8, 128], strides = [1, 1]} : vector<64x128xf32> to vector<8x128xf32>
    %24 = arith.addf %23, %22 : vector<8x128xf32>
    %25 = math.tanh %24 : vector<8x128xf32>
    %26 = arith.truncf %25 : vector<8x128xf32> to vector<8x128xbf16>
    %cst_14 = arith.constant dense<0.000000e+00> : vector<8x128xf32>
    %27 = tpu.matmul %26, %0, %cst_14 {dimension_numbers = #tpu.dot_dimension_numbers<[1], [0], [0], [1], [0, 0, 1, 1], [], []>} : vector<8x128xbf16>, vector<128x128xbf16>, vector<8x128xf32> -> vector<8x128xf32>
    %28 = vector.extract_strided_slice %8 {offsets = [32, 0], sizes = [8, 128], strides = [1, 1]} : vector<64x128xf32> to vector<8x128xf32>
    %29 = arith.addf %28, %27 : vector<8x128xf32>
    %30 = math.tanh %29 : vector<8x128xf32>
    %31 = arith.truncf %30 : vector<8x128xf32> to vector<8x128xbf16>
    %cst_15 = arith.constant dense<0.000000e+00> : vector<8x128xf32>
    %32 = tpu.matmul %31, %0, %cst_15 {dimension_numbers = #tpu.dot_dimension_numbers<[1], [0], [0], [1], [0, 0, 1, 1], [], []>} : vector<8x128xbf16>, vector<128x128xbf16>, vector<8x128xf32> -> vector<8x128xf32>
    %33 = vector.extract_strided_slice %8 {offsets = [40, 0], sizes = [8, 128], strides = [1, 1]} : vector<64x128xf32> to vector<8x128xf32>
    %34 = arith.addf %33, %32 : vector<8x128xf32>
    %35 = math.tanh %34 : vector<8x128xf32>
    %36 = arith.truncf %35 : vector<8x128xf32> to vector<8x128xbf16>
    %cst_16 = arith.constant dense<0.000000e+00> : vector<8x128xf32>
    %37 = tpu.matmul %36, %0, %cst_16 {dimension_numbers = #tpu.dot_dimension_numbers<[1], [0], [0], [1], [0, 0, 1, 1], [], []>} : vector<8x128xbf16>, vector<128x128xbf16>, vector<8x128xf32> -> vector<8x128xf32>
    %38 = vector.extract_strided_slice %8 {offsets = [48, 0], sizes = [8, 128], strides = [1, 1]} : vector<64x128xf32> to vector<8x128xf32>
    %39 = arith.addf %38, %37 : vector<8x128xf32>
    %40 = math.tanh %39 : vector<8x128xf32>
    %41 = arith.truncf %40 : vector<8x128xf32> to vector<8x128xbf16>
    %cst_17 = arith.constant dense<0.000000e+00> : vector<8x128xf32>
    %42 = tpu.matmul %41, %0, %cst_17 {dimension_numbers = #tpu.dot_dimension_numbers<[1], [0], [0], [1], [0, 0, 1, 1], [], []>} : vector<8x128xbf16>, vector<128x128xbf16>, vector<8x128xf32> -> vector<8x128xf32>
    %43 = vector.extract_strided_slice %8 {offsets = [56, 0], sizes = [8, 128], strides = [1, 1]} : vector<64x128xf32> to vector<8x128xf32>
    %44 = arith.addf %43, %42 : vector<8x128xf32>
    %45 = math.tanh %44 : vector<8x128xf32>
    %46 = arith.truncf %45 : vector<8x128xf32> to vector<8x128xbf16>
    %cst_18 = arith.constant dense<0.000000e+00> : vector<8x256xf32>
    %47 = tpu.matmul %46, %1, %cst_18 {dimension_numbers = #tpu.dot_dimension_numbers<[1], [0], [0], [1], [0, 0, 1, 1], [], []>} : vector<8x128xbf16>, vector<128x256xbf16>, vector<8x256xf32> -> vector<8x256xf32>
    %48 = vector.broadcast %2 : vector<1x256xf32> to vector<8x256xf32>
    %49 = arith.addf %47, %48 : vector<8x256xf32>
    %c0_19 = arith.constant 0 : index
    %c0_20 = arith.constant 0 : index
    %50 = vector.load %arg6[%c0_19, %c0_20] : memref<8x256xf32, #tpu.memory_space<vmem>>, vector<8x256xf32>
    tpu.vector_store %arg6[%c0_19, %c0_20], %49 {strides = array<i32>} : memref<8x256xf32, #tpu.memory_space<vmem>>, vector<8x256xf32>,
    return
  }
}

</mosaic_0001>

<bundles_post_ra>
// kernel: handwriting_rnn_forward.1
= control target key start
LH: loop header
LB: loop body
LE: loop exit
PB: predicated region body
PF: predicated region fallthrough
CT: control target
= control target key end

     0   :  { %v1201_v2 = vmov 0.0   ;;  %s1569_s0 = inlined_call_operand.vmem [shape: bf16[64,256], index: 0, kind: input, shape index: {}]   ;;  %s1570_s1 = inlined_call_operand.vmem [shape: bf16[256,128], index: 1, kind: input, shape index: {}]   ;;  %s1571_s2 = inlined_call_operand.vmem [shape: bf16[128,128], index: 2, kind: input, shape index: {}]   ;;  %s1572_s3 = inlined_call_operand.vmem [shape: f32[1,128], index: 3, kind: input, shape index: {}]   ;;  %s1573_s4 = inlined_call_operand.vmem [shape: bf16[128,256], index: 4, kind: input, shape index: {}]   ;;  %s1574_s5 = inlined_call_operand.vmem [shape: f32[1,256], index: 5, kind: input, shape index: {}]   ;;  %s1575_s6 = inlined_call_operand.hbm [shape: f32[8,256], index: 6, kind: output, shape index: {}]  }
   0x1   :  { %v1101_v0 = vld [vmem:[%s1570_s1 + $0x40] sm:$0xff]   ;;  %957 = vmatprep.subr.bf16.mxu1 %v1201_v2  ;;  %v1103_v3 = vld [vmem:[%s1570_s1 + $0x48] sm:$0xff]   ;;  %v1105_v5 = vld [vmem:[%s1570_s1 + $0x50] sm:$0xff]  }
   0x2   :  { %v1102_v1 = vld [vmem:[%s1570_s1] sm:$0xff]   ;;  %854 = vmatprep.subr.bf16.mxu0 %v1101_v0  ;;  %v1104_v4 = vld [vmem:[%s1570_s1 + $0x8] sm:$0xff]   ;;  %v1106_v6 = vld [vmem:[%s1570_s1 + $0x10] sm:$0xff]  }
   0x3   :  { %855 = vmatpush3.bf16.msra.mxu0 %v1102_v1  ;;  %v1107_v7 = vld [vmem:[%s1570_s1 + $0x58] sm:$0xff]   ;;  %v1109_v9 = vld [vmem:[%s1570_s1 + $0x60] sm:$0xff]   ;;  %v1111_v11 = vld [vmem:[%s1570_s1 + $0x68] sm:$0xff]  }
   0x4   :  { %856 = vmatprep.subr.bf16.mxu0 %v1103_v3  ;;  %v1108_v8 = vld [vmem:[%s1570_s1 + $0x18] sm:$0xff]   ;;  %v1110_v10 = vld [vmem:[%s1570_s1 + $0x20] sm:$0xff]   ;;  %v1112_v12 = vld [vmem:[%s1570_s1 + $0x28] sm:$0xff]  }
   0x5   :  { %v1119_v13 = vld [vmem:[%s1569_s0 + $0x4] ss:$8 sps:$4 sm:$0xff]   ;;  %v1113_v15 = vld [vmem:[%s1570_s1 + $0x70] sm:$0xff]   ;;  %v1115_v18 = vld [vmem:[%s1570_s1 + $0x78] sm:$0xff]  }
   0x6   :  { %v1283_v14 = vld [vmem:[%s1571_s2] sm:$0xff]   ;;  %273 = vmatprep.mubr.bf16.mxu0 %v1119_v13  ;;  %v1292_v16 = vld [vmem:[%s1571_s2 + $0x8] sm:$0xff]   ;;  %v1114_v17 = vld [vmem:[%s1570_s1 + $0x30] sm:$0xff]  }
   0x7   :  { %857 = vmatpush3.bf16.msra.mxu0 %v1104_v4  ;;  %958 = vmatpush3.bf16.msra.mxu1 %v1283_v14  ;;  %v1304_v19 = vld [vmem:[%s1571_s2 + $0x10] sm:$0xff]   ;;  %v1116_v20 = vld [vmem:[%s1570_s1 + $0x38] sm:$0xff]   ;;  %v1117_v21 = vld [vmem:[%s1569_s0] ss:$8 sps:$4 sm:$0xff]  }
   0x8   :  { %858 = vmatprep.subr.bf16.mxu0 %v1105_v5  ;;  %959 = vmatprep.subr.bf16.mxu1 %v1201_v2 }
   0xb   :  { %859 = vmatpush3.bf16.msra.mxu0 %v1106_v6  ;;  %960 = vmatpush3.bf16.msra.mxu1 %v1292_v16 }
   0xc   :  { %860 = vmatprep.subr.bf16.mxu0 %v1107_v7  ;;  %961 = vmatprep.subr.bf16.mxu1 %v1201_v2 }
   0xf   :  { %861 = vmatpush3.bf16.msra.mxu0 %v1108_v8  ;;  %962 = vmatpush3.bf16.msra.mxu1 %v1304_v19 }
  0x10   :  { %862 = vmatprep.subr.bf16.mxu0 %v1109_v9  ;;  %963 = vmatprep.subr.bf16.mxu1 %v1201_v2 }
  0x13   :  { %863 = vmatpush3.bf16.msra.mxu0 %v1110_v10 }
  0x14   :  { %864 = vmatprep.subr.bf16.mxu0 %v1111_v11 }
  0x17   :  { %865 = vmatpush3.bf16.msra.mxu0 %v1112_v12 }
  0x18   :  { %866 = vmatprep.subr.bf16.mxu0 %v1113_v15 }
  0x1b   :  { %867 = vmatpush3.bf16.msra.mxu0 %v1114_v17 }
  0x1c   :  { %868 = vmatprep.subr.bf16.mxu0 %v1115_v18 }
  0x1f   :  { %869 = vmatpush3.bf16.msra.mxu0 %v1116_v20 }
  0x20   :  { %11 = vsyncpa [#allocation3], 0  ;;  %977 = vmatprep.subr.bf16.mxu0 %v1201_v2  ;;  %v1326_v22 = vld [vmem:[%s1571_s2 + $0x18] sm:$0xff]   ;;  %v1335_v23 = vld [vmem:[%s1571_s2 + $0x20] sm:$0xff]   ;;  %vm1202_vm0 = vmmov 0   ;;  %s1204_s15 = smov [#allocation2]  }
  0x21   :  { %964 = vmatpush3.bf16.msra.mxu1 %v1326_v22  ;;  %v1344_v24 = vld [vmem:[%s1571_s2 + $0x28] sm:$0xff]   ;;  %973 = vmatprep.mubr.msk.bf16.mxu1 %vm1202_vm0, %v1201_v2  ;;  %v1352_v25 = vld [vmem:[%s1571_s2 + $0x30] sm:$0xff]   ;;  %v1361_v26 = vld [vmem:[%s1571_s2 + $0x38] sm:$0xff]   ;;  %s797_s16 = sshll.u32 %s1204_s15, 4  ;;  %s798_s16 = int_to_ptr.vmem [resolvable:$true] %s797_s16 }
  0x22   :  { %274 = vmatmul.mubr.bf16.vlgmr.msra.gmra.mrb[0].mxu0 %v1117_v21  ;;  %965 = vmatprep.subr.bf16.mxu1 %v1201_v2  ;;  %v1128_v27 = vld [vmem:[%s1569_s0 + $0x14] ss:$8 sps:$4 sm:$0xff]   ;;  %v1130_v28 = vld [vmem:[%s1569_s0 + $0x10] ss:$8 sps:$4 sm:$0xff]   ;;  %v1131_v29 = vld [vmem:[%s1569_s0 + $0x24] ss:$8 sps:$4 sm:$0xff]   ;;  %p1182_p1 = scmp.lt.s32.totalorder %s798_s16, %s798_s16 }
  0x23   :  { %978 = vmatpush3.bf16.msra.mxu0 %v1283_v14  ;;  %281 = vmatprep.mubr.bf16.mxu0 %v1128_v27  ;;  %v1133_v30 = vld [vmem:[%s1569_s0 + $0x20] ss:$8 sps:$4 sm:$0xff]   ;;  %v1134_v41 = vld [vmem:[%s1569_s0 + $0x34] ss:$8 sps:$4 sm:$0xff]   ;;  %v1136_v42 = vld [vmem:[%s1569_s0 + $0x30] ss:$8 sps:$4 sm:$0xff]  }
  0x24   :  { %979 = vmatprep.subr.bf16.mxu0 %v1201_v2  ;;  %v1385_v32 = vld [vmem:[%s1572_s3] ss:$0 sm:$0xff]  ;;  %s1177_s17 = scalar_lea.vmem %s798_s16, 256 }
  0x25   :  { %966 = vmatpush3.bf16.msra.mxu1 %v1335_v23  ;;  %p1178_p0 = scmp.ne.s32.totalorder %s798_s16, %s1177_s17  ;;  %p1183_p2 = scmp.lt.s32.totalorder %s1177_s17, %s1177_s17 }
  0x26   :  { %967 = vmatprep.subr.bf16.mxu1 %v1201_v2 }
  0x27   :  { %980 = vmatpush3.bf16.msra.mxu0 %v1292_v16  ;;  %p1184_p3 = por %p1183_p2, %p1182_p1 }
  0x28   :  { %981 = vmatprep.subr.bf16.mxu0 %v1201_v2 }
  0x29   :  { %968 = vmatpush3.bf16.msra.mxu1 %v1344_v24  ;;  %p1185_p4 = pnand %p1184_p3, %p1178_p0 }
  0x2a   :  { %969 = vmatprep.subr.bf16.mxu1 %v1201_v2  ;;  %282 = vmatmul.mubr.bf16.gmra.mrb[4].mxu0 %v1130_v28 }
  0x2b   :  { %982 = vmatpush3.bf16.msra.mxu0 %v1304_v19  ;;  %289 = vmatprep.mubr.bf16.mxu0 %v1131_v29 }
  0x2c   :  { %983 = vmatprep.subr.bf16.mxu0 %v1201_v2 }
  0x2d   :  { %970 = vmatpush3.bf16.msra.mxu1 %v1352_v25 }
  0x2e   :  { %971 = vmatprep.subr.bf16.mxu1 %v1201_v2 }
  0x2f   :  { %984 = vmatpush3.bf16.msra.mxu0 %v1326_v22 }
  0x30   :  { %985 = vmatprep.subr.bf16.mxu0 %v1201_v2 }
  0x31   :  { %972 = vmatpush3.bf16.msra.mxu1 %v1361_v26 }
  0x32   :  { %997 = vmatprep.subr.bf16.mxu1 %v1201_v2  ;;  %290 = vmatmul.mubr.bf16.gmra.mrb[8].mxu0 %v1133_v30 }
  0x33   :  { %986 = vmatpush3.bf16.msra.mxu0 %v1335_v23  ;;  %297 = vmatprep.mubr.bf16.mxu0 %v1134_v41 }
  0x34   :  { %987 = vmatprep.subr.bf16.mxu0 %v1201_v2 }
  0x37   :  { %988 = vmatpush3.bf16.msra.mxu0 %v1344_v24 }
  0x38   :  { %989 = vmatprep.subr.bf16.mxu0 %v1201_v2 }
  0x3a   :  { %298 = vmatmul.mubr.bf16.gmra.mrb[12].mxu0 %v1136_v42  ;;  %v1145_v42 = vld [vmem:[%s1573_s4 + $0x24] ss:$8 sps:$4 sm:$0xff]  }
  0x3b   :  { %990 = vmatpush3.bf16.msra.mxu0 %v1352_v25  ;;  %993 = vmatprep.mubr.msk.bf16.mxu0 %vm1202_vm0, %v1201_v2 }
  0x3c   :  { %991 = vmatprep.subr.bf16.mxu0 %v1201_v2 }
  0x3f   :  { %992 = vmatpush3.bf16.msra.mxu0 %v1361_v26 }
  0x40   :  { %1017 = vmatprep.subr.bf16.mxu0 %v1201_v2 }
  0xf5   :  { %v870_v31 = vpop.f32.mrb[0].mxu0 }
  0xf6   :  { %v871_v33 = vpop.f32.mrb[1].mxu0 }
  0xf7   :  { %v872_v34 = vadd.f32 %v871_v33, %v870_v31  ;;  %v873_v35 = vpop.f32.mrb[2].mxu0 }
  0xf8   :  { %v874_v36 = vpop.f32.mrb[3].mxu0 }
  0xf9   :  { %v276_v37 = vadd.f32 %v872_v34, %v1385_v32  ;;  %v875_v38 = vadd.f32 %v874_v36, %v873_v35 }
  0xfb   :  { %1161 = vtanh.f32 %v276_v37  ;;  %v279_v55 = vadd.f32 %v875_v38, %v1385_v32 }
  0xfd   :  { %v876_v43 = vpop.f32.mrb[4].mxu0 }
  0xfe   :  { %v877_v44 = vpop.f32.mrb[5].mxu0 }
  0xff   :  { %v878_v45 = vadd.f32 %v877_v44, %v876_v43  ;;  %v879_v46 = vpop.f32.mrb[6].mxu0  ;;  %v1143_v43 = vld [vmem:[%s1573_s4 + $0x20] ss:$8 sps:$4 sm:$0xff]   ;;  %v1148_v44 = vld [vmem:[%s1573_s4 + $0x34] ss:$8 sps:$4 sm:$0xff]  }
 0x100   :  { %v880_v47 = vpop.f32.mrb[7].mxu0 }
 0x101   :  { %v1414_v48 = vadd.f32 %v880_v47, %v879_v46  ;;  %v284_v6 = vadd.f32 %v878_v45, %v1385_v32  ;;  %v1146_v45 = vld [vmem:[%s1573_s4 + $0x30] ss:$8 sps:$4 sm:$0xff]  }
 0x103   :  { %v287_v15 = vadd.f32 %v1414_v48, %v1385_v32 }
 0x105   :  { %v1162_v39 = vpop.eup %1161  ;;  %v882_v49 = vpop.f32.mrb[8].mxu0 }
 0x106   :  { %v307_v40 = vpack.c.bf16 %v1162_v39, %v1162_v39  ;;  %v883_v50 = vpop.f32.mrb[9].mxu0 }
 0x107   :  { %v1416_v51 = vadd.f32 %v883_v50, %v882_v49  ;;  %v885_v52 = vpop.f32.mrb[10].mxu0 }
 0x108   :  { %974 = vmatmul.mubr.bf16.vlgmr.msra.gmra.mrb[0].mxu1 %v307_v40  ;;  %v886_v53 = vpop.f32.mrb[11].mxu0 }
 0x109   :  { %998 = vmatpush3.bf16.msra.mxu1 %v1283_v14  ;;  %1013 = vmatprep.mubr.msk.bf16.mxu1 %vm1202_vm0, %v1201_v2  ;;  %v1418_v54 = vadd.f32 %v886_v53, %v885_v52  ;;  %v292_v30 = vadd.f32 %v1416_v51, %v1385_v32 }
 0x10a   :  { %999 = vmatprep.subr.bf16.mxu1 %v1201_v2 }
 0x10d   :  { %1000 = vmatpush3.bf16.msra.mxu1 %v1292_v16  ;;  %v888_v63 = vpop.f32.mrb[12].mxu0 }
 0x10e   :  { %1001 = vmatprep.subr.bf16.mxu1 %v1201_v2  ;;  %v889_v0 = vpop.f32.mrb[13].mxu0 }
 0x10f   :  { %v1439_v1 = vadd.f32 %v889_v0, %v888_v63  ;;  %v891_v3 = vpop.f32.mrb[14].mxu0 }
 0x110   :  { %v892_v4 = vpop.f32.mrb[15].mxu0 }
 0x111   :  { %1002 = vmatpush3.bf16.msra.mxu1 %v1304_v19  ;;  %v1441_v5 = vadd.f32 %v892_v4, %v891_v3  ;;  %v300_v46 = vadd.f32 %v1439_v1, %v1385_v32 }
 0x112   :  { %1003 = vmatprep.subr.bf16.mxu1 %v1201_v2 }
 0x113   :  { %v303_v63 = vadd.f32 %v1441_v5, %v1385_v32 }
 0x115   :  { %1004 = vmatpush3.bf16.msra.mxu1 %v1326_v22 }
 0x116   :  { %1005 = vmatprep.subr.bf16.mxu1 %v1201_v2 }
 0x119   :  { %1006 = vmatpush3.bf16.msra.mxu1 %v1335_v23 }
 0x11a   :  { %1007 = vmatprep.subr.bf16.mxu1 %v1201_v2 }
 0x11d   :  { %1008 = vmatpush3.bf16.msra.mxu1 %v1344_v24 }
 0x11e   :  { %1009 = vmatprep.subr.bf16.mxu1 %v1201_v2 }
 0x121   :  { %1010 = vmatpush3.bf16.msra.mxu1 %v1352_v25 }
 0x122   :  { %1011 = vmatprep.subr.bf16.mxu1 %v1201_v2 }
 0x125   :  { %1012 = vmatpush3.bf16.msra.mxu1 %v1361_v26 }
 0x126   :  { %1037 = vmatprep.subr.bf16.mxu1 %v1201_v2 }
 0x1db   :  { %v390_v56 = vpop.f32.mrb[0].mxu1 }
 0x1dc   :  { %v396_v57 = vadd.f32 %v390_v56, %v279_v55  ;;  %v975_v58 = vpop.f32.mrb[1].mxu1  ;;  %v1149_v55 = vld [vmem:[%s1573_s4 + $0x40] ss:$8 sps:$4 sm:$0xff]   ;;  %v1154_v56 = vld [vmem:[%s1573_s4 + $0x54] ss:$8 sps:$4 sm:$0xff]  }
 0x1dd   :  { %v393_v59 = vpop.f32.mrb[2].mxu1  ;;  %v1157_v58 = vld [vmem:[%s1573_s4 + $0x64] ss:$8 sps:$4 sm:$0xff]  }
 0x1de   :  { %1163 = vtanh.f32 %v396_v57  ;;  %v976_v60 = vpop.f32.mrb[3].mxu1  ;;  %v1152_v57 = vld [vmem:[%s1573_s4 + $0x50] ss:$8 sps:$4 sm:$0xff]   ;;  %v1155_v59 = vld [vmem:[%s1573_s4 + $0x60] ss:$8 sps:$4 sm:$0xff]  }
 0x1df   :  { %v1160_v60 = vld [vmem:[%s1573_s4 + $0x74] ss:$8 sps:$4 sm:$0xff]  }
 0x1e8   :  { %v1164_v61 = vpop.eup %1163 }
 0x1e9   :  { %v398_v62 = vpack.c.bf16 %v1164_v61, %v1164_v61  ;;  %v1158_v61 = vld [vmem:[%s1573_s4 + $0x70] ss:$8 sps:$4 sm:$0xff]  }
 0x1eb   :  { %994 = vmatmul.mubr.bf16.vlgmr.msra.gmra.mrb[16].mxu0 %v398_v62  ;;  %v1203_v62 = vmov 0  }
 0x1ec   :  { %1018 = vmatpush3.bf16.msra.mxu0 %v1283_v14  ;;  %1033 = vmatprep.mubr.msk.bf16.mxu0 %vm1202_vm0, %v1201_v2 }
 0x1ed   :  { %1019 = vmatprep.subr.bf16.mxu0 %v1201_v2 }
 0x1f0   :  { %1020 = vmatpush3.bf16.msra.mxu0 %v1292_v16 }
 0x1f1   :  { %1021 = vmatprep.subr.bf16.mxu0 %v1201_v2 }
 0x1f4   :  { %1022 = vmatpush3.bf16.msra.mxu0 %v1304_v19 }
 0x1f5   :  { %1023 = vmatprep.subr.bf16.mxu0 %v1201_v2 }
 0x1f8   :  { %1024 = vmatpush3.bf16.msra.mxu0 %v1326_v22 }
 0x1f9   :  { %1025 = vmatprep.subr.bf16.mxu0 %v1201_v2 }
 0x1fc   :  { %1026 = vmatpush3.bf16.msra.mxu0 %v1335_v23 }
 0x1fd   :  { %1027 = vmatprep.subr.bf16.mxu0 %v1201_v2 }
 0x200   :  { %1028 = vmatpush3.bf16.msra.mxu0 %v1344_v24 }
 0x201   :  { %1029 = vmatprep.subr.bf16.mxu0 %v1201_v2 }
 0x204   :  { %1030 = vmatpush3.bf16.msra.mxu0 %v1352_v25 }
 0x205   :  { %1031 = vmatprep.subr.bf16.mxu0 %v1201_v2 }
 0x208   :  { %1032 = vmatpush3.bf16.msra.mxu0 %v1361_v26 }
 0x209   :  { %1057 = vmatprep.subr.bf16.mxu0 %v1201_v2 }
 0x2be   :  { %v433_v7 = vpop.f32.mrb[16].mxu0 }
 0x2bf   :  { %v439_v8 = vadd.f32 %v433_v7, %v284_v6  ;;  %v995_v9 = vpop.f32.mrb[17].mxu0 }
 0x2c0   :  { %v436_v10 = vpop.f32.mrb[18].mxu0  ;;  %v658_v9 = vlaneseq }
 0x2c1   :  { %1165 = vtanh.f32 %v439_v8  ;;  %v996_v11 = vpop.f32.mrb[19].mxu0 }
 0x2c2   :  { %v659_v10 = vshrl.u32 %v658_v9, 7 }
 0x2c4   :  { %v660_v11 = vsub.s32 0, %v659_v10 }
 0x2cb   :  { %v1166_v12 = vpop.eup %1165 }
 0x2cc   :  { %v441_v13 = vpack.c.bf16 %v1166_v12, %v1166_v12  ;;  %v57_v12 = vld [vmem:[%s1574_s5] sm:$0x3] }
 0x2ce   :  { %1014 = vmatmul.mubr.bf16.vlgmr.msra.gmra.mrb[4].mxu1 %v441_v13  ;;  %v664_v13 = vsub.s32 1, %v659_v10 }
 0x2cf   :  { %1038 = vmatpush3.bf16.msra.mxu1 %v1283_v14  ;;  %1053 = vmatprep.mubr.msk.bf16.mxu1 %vm1202_vm0, %v1201_v2 }
 0x2d0   :  { %1039 = vmatprep.subr.bf16.mxu1 %v1201_v2 }
 0x2d3   :  { %1040 = vmatpush3.bf16.msra.mxu1 %v1292_v16 }
 0x2d4   :  { %1041 = vmatprep.subr.bf16.mxu1 %v1201_v2 }
 0x2d7   :  { %1042 = vmatpush3.bf16.msra.mxu1 %v1304_v19 }
 0x2d8   :  { %1043 = vmatprep.subr.bf16.mxu1 %v1201_v2 }
 0x2db   :  { %1044 = vmatpush3.bf16.msra.mxu1 %v1326_v22 }
 0x2dc   :  { %1045 = vmatprep.subr.bf16.mxu1 %v1201_v2 }
 0x2df   :  { %1046 = vmatpush3.bf16.msra.mxu1 %v1335_v23 }
 0x2e0   :  { %1047 = vmatprep.subr.bf16.mxu1 %v1201_v2 }
 0x2e3   :  { %1048 = vmatpush3.bf16.msra.mxu1 %v1344_v24 }
 0x2e4   :  { %1049 = vmatprep.subr.bf16.mxu1 %v1201_v2 }
 0x2e7   :  { %1050 = vmatpush3.bf16.msra.mxu1 %v1352_v25 }
 0x2e8   :  { %1051 = vmatprep.subr.bf16.mxu1 %v1201_v2 }
 0x2eb   :  { %1052 = vmatpush3.bf16.msra.mxu1 %v1361_v26 }
 0x2ec   :  { %1077 = vmatprep.subr.bf16.mxu1 %v1201_v2 }
 0x3a1   :  { %v476_v17 = vpop.f32.mrb[4].mxu1 }
 0x3a2   :  { %v482_v18 = vadd.f32 %v476_v17, %v287_v15  ;;  %v1015_v20 = vpop.f32.mrb[5].mxu1  ;;  %v661_v15 = vrot.slane %v57_v12, %v660_v11  ;;  %v665_v17 = vrot.slane %v57_v12, %v664_v13 }
 0x3a3   :  { %v479_v21 = vpop.f32.mrb[6].mxu1 }
 0x3a4   :  { %1167 = vtanh.f32 %v482_v18  ;;  %v1016_v27 = vpop.f32.mrb[7].mxu1 }
 0x3ae   :  { %v1168_v28 = vpop.eup %1167 }
 0x3af   :  { %v484_v29 = vpack.c.bf16 %v1168_v28, %v1168_v28 }
 0x3b1   :  { %1034 = vmatmul.mubr.bf16.vlgmr.msra.gmra.mrb[20].mxu0 %v484_v29 }
 0x3b2   :  { %1058 = vmatpush3.bf16.msra.mxu0 %v1283_v14  ;;  %1073 = vmatprep.mubr.msk.bf16.mxu0 %vm1202_vm0, %v1201_v2 }
 0x3b3   :  { %1059 = vmatprep.subr.bf16.mxu0 %v1201_v2 }
 0x3b6   :  { %1060 = vmatpush3.bf16.msra.mxu0 %v1292_v16 }
 0x3b7   :  { %1061 = vmatprep.subr.bf16.mxu0 %v1201_v2 }
 0x3ba   :  { %1062 = vmatpush3.bf16.msra.mxu0 %v1304_v19 }
 0x3bb   :  { %1063 = vmatprep.subr.bf16.mxu0 %v1201_v2 }
 0x3be   :  { %1064 = vmatpush3.bf16.msra.mxu0 %v1326_v22 }
 0x3bf   :  { %1065 = vmatprep.subr.bf16.mxu0 %v1201_v2 }
 0x3c2   :  { %1066 = vmatpush3.bf16.msra.mxu0 %v1335_v23 }
 0x3c3   :  { %1067 = vmatprep.subr.bf16.mxu0 %v1201_v2 }
 0x3c6   :  { %1068 = vmatpush3.bf16.msra.mxu0 %v1344_v24 }
 0x3c7   :  { %1069 = vmatprep.subr.bf16.mxu0 %v1201_v2 }
 0x3ca   :  { %1070 = vmatpush3.bf16.msra.mxu0 %v1352_v25 }
 0x3cb   :  { %1071 = vmatprep.subr.bf16.mxu0 %v1201_v2 }
 0x3ce   :  { %1072 = vmatpush3.bf16.msra.mxu0 %v1361_v26 }
 0x484   :  { %v519_v31 = vpop.f32.mrb[20].mxu0 }
 0x485   :  { %v525_v33 = vadd.f32 %v519_v31, %v292_v30  ;;  %v1035_v34 = vpop.f32.mrb[21].mxu0 }
 0x486   :  { %v522_v35 = vpop.f32.mrb[22].mxu0 }
 0x487   :  { %1169 = vtanh.f32 %v525_v33  ;;  %v1036_v36 = vpop.f32.mrb[23].mxu0 }
 0x491   :  { %v1170_v37 = vpop.eup %1169 }
 0x492   :  { %v527_v38 = vpack.c.bf16 %v1170_v37, %v1170_v37 }
 0x494   :  { %1054 = vmatmul.mubr.bf16.vlgmr.msra.gmra.mrb[8].mxu1 %v527_v38 }
 0x495   :  { %1078 = vmatpush3.bf16.msra.mxu1 %v1283_v14  ;;  %1093 = vmatprep.mubr.msk.bf16.mxu1 %vm1202_vm0, %v1201_v2  ;;  %v295_v14 = vadd.f32 %v1418_v54, %v1385_v32  ;;  %v1151_v54 = vld [vmem:[%s1573_s4 + $0x44] ss:$8 sps:$4 sm:$0xff]  }
 0x496   :  { %1079 = vmatprep.subr.bf16.mxu1 %v1201_v2 }
 0x499   :  { %1080 = vmatpush3.bf16.msra.mxu1 %v1292_v16 }
 0x49a   :  { %1081 = vmatprep.subr.bf16.mxu1 %v1201_v2 }
 0x49d   :  { %1082 = vmatpush3.bf16.msra.mxu1 %v1304_v19 }
 0x49e   :  { %1083 = vmatprep.subr.bf16.mxu1 %v1201_v2 }
 0x4a1   :  { %1084 = vmatpush3.bf16.msra.mxu1 %v1326_v22 }
 0x4a2   :  { %1085 = vmatprep.subr.bf16.mxu1 %v1201_v2 }
 0x4a5   :  { %1086 = vmatpush3.bf16.msra.mxu1 %v1335_v23 }
 0x4a6   :  { %1087 = vmatprep.subr.bf16.mxu1 %v1201_v2 }
 0x4a9   :  { %1088 = vmatpush3.bf16.msra.mxu1 %v1344_v24  ;;  %v1137_v24 = vld [vmem:[%s1573_s4] ss:$8 sps:$4 sm:$0xff]  }
 0x4aa   :  { %1089 = vmatprep.subr.bf16.mxu1 %v1201_v2 }
 0x4ad   :  { %1090 = vmatpush3.bf16.msra.mxu1 %v1352_v25  ;;  %v1142_v25 = vld [vmem:[%s1573_s4 + $0x14] ss:$8 sps:$4 sm:$0xff]  }
 0x4ae   :  { %1091 = vmatprep.subr.bf16.mxu1 %v1201_v2  ;;  %v1139_v2 = vld [vmem:[%s1573_s4 + $0x4] ss:$8 sps:$4 sm:$0xff]  }
 0x4af   :  { %748 = vmatprep.subr.bf16.mxu0 %v1139_v2 }
 0x4b1   :  { %1092 = vmatpush3.bf16.msra.mxu1 %v1361_v26  ;;  %v1140_v26 = vld [vmem:[%s1573_s4 + $0x10] ss:$8 sps:$4 sm:$0xff]  }
 0x567   :  { %v562_v16 = vpop.f32.mrb[8].mxu1 }
 0x568   :  { %v568_v19 = vadd.f32 %v562_v16, %v295_v14  ;;  %v1055_v22 = vpop.f32.mrb[9].mxu1 }
 0x569   :  { %v565_v39 = vpop.f32.mrb[10].mxu1 }
 0x56a   :  { %1171 = vtanh.f32 %v568_v19  ;;  %v1056_v23 = vpop.f32.mrb[11].mxu1 }
 0x574   :  { %v1172_v40 = vpop.eup %1171 }
 0x575   :  { %v570_v41 = vpack.c.bf16 %v1172_v40, %v1172_v40 }
 0x577   :  { %1074 = vmatmul.mubr.bf16.vlgmr.msra.gmra.mrb[24].mxu0 %v570_v41 }
 0x578   :  { %749 = vmatpush1.bf16.msra.mxu0 %v1137_v24  ;;  %780 = vmatprep.mubr.bf16.mxu0 %v1203_v62 }
 0x579   :  { %750 = vmatprep.subr.bf16.mxu0 %v1142_v25 }
 0x57c   :  { %751 = vmatpush1.bf16.msra.mxu0 %v1140_v26 }
 0x57d   :  { %752 = vmatprep.subr.bf16.mxu0 %v1145_v42 }
 0x580   :  { %753 = vmatpush1.bf16.msra.mxu0 %v1143_v43 }
 0x581   :  { %754 = vmatprep.subr.bf16.mxu0 %v1148_v44 }
 0x584   :  { %755 = vmatpush1.bf16.msra.mxu0 %v1146_v45 }
 0x585   :  { %756 = vmatprep.subr.bf16.mxu0 %v1151_v54 }
 0x588   :  { %757 = vmatpush1.bf16.msra.mxu0 %v1149_v55 }
 0x589   :  { %758 = vmatprep.subr.bf16.mxu0 %v1154_v56 }
 0x58c   :  { %759 = vmatpush1.bf16.msra.mxu0 %v1152_v57 }
 0x58d   :  { %760 = vmatprep.subr.bf16.mxu0 %v1157_v58 }
 0x590   :  { %761 = vmatpush1.bf16.msra.mxu0 %v1155_v59 }
 0x591   :  { %762 = vmatprep.subr.bf16.mxu0 %v1160_v60 }
 0x594   :  { %763 = vmatpush1.bf16.msra.mxu0 %v1158_v61 }
 0x64a   :  { %v605_v47 = vpop.f32.mrb[24].mxu0 }
 0x64b   :  { %v611_v48 = vadd.f32 %v605_v47, %v300_v46  ;;  %v1075_v49 = vpop.f32.mrb[25].mxu0 }
 0x64c   :  { %v608_v50 = vpop.f32.mrb[26].mxu0 }
 0x64d   :  { %1173 = vtanh.f32 %v611_v48  ;;  %v1076_v51 = vpop.f32.mrb[27].mxu0 }
 0x657   :  { %v1174_v52 = vpop.eup %1173 }
 0x658   :  { %v613_v53 = vpack.c.bf16 %v1174_v52, %v1174_v52 }
 0x65a   :  { %1094 = vmatmul.mubr.bf16.vlgmr.msra.gmra.mrb[12].mxu1 %v613_v53 }
 0x72d   :  { %v648_v0 = vpop.f32.mrb[12].mxu1 }
 0x72e   :  { %v654_v1 = vadd.f32 %v648_v0, %v303_v63  ;;  %v1095_v3 = vpop.f32.mrb[13].mxu1 }
 0x72f   :  { %v651_v4 = vpop.f32.mrb[14].mxu1 }
 0x730   :  { %1175 = vtanh.f32 %v654_v1  ;;  %v1096_v6 = vpop.f32.mrb[15].mxu1 }
 0x73a   :  { %v1176_v7 = vpop.eup %1175 }
 0x73b   :  { %v656_v8 = vpack.c.bf16 %v1176_v7, %v1176_v7 }
 0x73d   :  { %781 = vmatmul.mubr.bf16.vlgmr.msra.gmra.mrb[28].mxu0 %v656_v8 }
 0x810   :  { %v782_v32 = vpop.f32.mrb[28].mxu0 }
 0x811   :  { %v783_v5 = vadd.f32 %v782_v32, %v661_v15  ;;  %v784_v18 = vpop.f32.mrb[29].mxu0 }
 0x812   :  { %v785_v20 = vadd.f32 %v784_v18, %v665_v17  ;;  %v786_v21 = vpop.f32.mrb[30].mxu0 }
 0x813   :  { %789 = vst [vmem:[#allocation2] sm:$0xff] %v783_v5  ;;  %v787_v27 = vpop.f32.mrb[31].mxu0 }
 0x814   :  { %790 = vst [vmem:[#allocation2 + $0x8] sm:$0xff] %v785_v20 }
 0x815   :  { %1188 = shalt.err (!%p1185_p4)
}
 0x816   :  { %s1189_s19 = scalar_lea.hbm %s1575_s6, 256 }
 0x817   :  { %p1190_p5 = scmp.ne.s32.totalorder %s1575_s6, %s1189_s19  ;;  %p1193_p6 = scmp.lt.u32.totalorder %s1189_s19, %s1575_s6 }
 0x819   :  { %p1195_p7 = pnand %p1193_p6, %p1190_p5 }
 0x81b   :  { %1198 = shalt.err (!%p1195_p7)
}
 0x81c   :  { %800 = dma.vmem_to_hbm [thread:$0]  %s798_s16, 256, %s1575_s6, [#allocation3]  }
 0x81d   :  { %1199 = dma.done.wait [#allocation3], 256  }
 0x81e   :  { %1200 = vsyncadd [#allocation3], 4294967040 }
 0x81f   :  { %804 = vsyncpa [#allocation3], 1 }

</bundles_post_ra>
